<compile_context>
chip_gen: v7x
topology: tpu7x:2x2x1
jax: 0.10.0
libtpu: 0.0.40
codegen_flags: <defaults>
</compile_context>

<pallas_src>
import functools

import jax
import jax.numpy as jnp
from jax.experimental import pallas as pl
from jax.experimental.pallas import tpu as pltpu

EPS = 1e-5
MOMENTUM = 0.9
_VMEM_LIMIT = 32 * 1024 * 1024


def _pick_l_tile(l, c, dtype_bytes):
    """Largest lane-dense spatial tile that keeps a (1, C, l_tile) block small."""
    budget = 2 * 1024 * 1024  # bytes per block; double-buffered in/out stays << VMEM
    for cand in (2048, 1024, 512, 256, 128):
        if l % cand == 0 and c * cand * dtype_bytes <= budget:
            return cand
    return l  # fall back to full (untiled) spatial axis


def _bn_reduce_kernel(inv_m, x_ref, g_ref, b_ref, mm_ref, mv_ref,
                      scale_ref, shift_ref, nmm_ref, nmv_ref,
                      sum_sc, sq_sc):
    ni = pl.program_id(0)
    li = pl.program_id(1)

    @pl.when((ni == 0) & (li == 0))
    def _init():
        sum_sc[...] = jnp.zeros_like(sum_sc)
        sq_sc[...] = jnp.zeros_like(sq_sc)

    x = x_ref[0].astype(jnp.float32)                       # (C, l_tile), cast per-tile
    sum_sc[...] += jnp.sum(x, axis=1, keepdims=True)       # (C, 1) lane reduce (XLU)
    sq_sc[...] += jnp.sum(x * x, axis=1, keepdims=True)    # (C, 1)

    @pl.when((ni == pl.num_programs(0) - 1) & (li == pl.num_programs(1) - 1))
    def _finalize():
        mean = sum_sc[...] * inv_m                         # (C, 1)
        # Single-pass variance E[x^2]-E[x]^2 with f32 accumulators (X read only twice total).
        var = sq_sc[...] * inv_m - mean * mean
        inv_std = jax.lax.rsqrt(var + EPS)                 # EUP rsqrt, once per channel
        g = g_ref[...].astype(jnp.float32)
        b = b_ref[...].astype(jnp.float32)
        scale = g * inv_std
        shift = b - mean * scale
        scale_ref[...] = scale
        shift_ref[...] = shift
        nmm_ref[...] = (MOMENTUM * mm_ref[...].astype(jnp.float32)
                        + (1.0 - MOMENTUM) * mean).astype(nmm_ref.dtype)
        # Biased variance for the moving update, matching the d2l batch_norm spec.
        nmv_ref[...] = (MOMENTUM * mv_ref[...].astype(jnp.float32)
                        + (1.0 - MOMENTUM) * var).astype(nmv_ref.dtype)


def _bn_apply_kernel(scale_ref, shift_ref, x_ref, y_ref):
    scale = scale_ref[...]                 # (C, 1) f32, broadcast along lanes (cheap splat)
    shift = shift_ref[...]                 # (C, 1) f32
    x = x_ref[...].astype(jnp.float32)     # (1, C, l_tile)
    y_ref[...] = (x * scale[None] + shift[None]).astype(y_ref.dtype)


def batch_norm_2d(x_nchw, gamma, beta, moving_mean, moving_var):
    """Training-mode BatchNorm2d forward.

    x_nchw : (N, C, H, W);  gamma/beta/moving_mean/moving_var : (1, C, 1, 1)
    Returns (Y in NCHW, new_moving_mean, new_moving_var) with original shapes.
    """
    n, c, h, w = x_nchw.shape
    l = h * w
    x3 = x_nchw.reshape(n, c, l)            # free reshape — no HBM transpose passes
    g = gamma.reshape(c, 1)
    b = beta.reshape(c, 1)
    mm = moving_mean.reshape(c, 1)
    mv = moving_var.reshape(c, 1)

    lt = _pick_l_tile(l, c, x_nchw.dtype.itemsize)
    n_lt = l // lt
    inv_m = 1.0 / float(n * l)

    x_spec = pl.BlockSpec((1, c, lt), lambda ni, li: (ni, 0, li))
    vec_spec = pl.BlockSpec((c, 1), lambda ni, li: (0, 0))

    # Pass 1: per-channel statistics -> scale/shift + moving-stat updates.
    scale, shift, new_mm, new_mv = pl.pallas_call(
        functools.partial(_bn_reduce_kernel, inv_m),
        out_shape=(
            jax.ShapeDtypeStruct((c, 1), jnp.float32),
            jax.ShapeDtypeStruct((c, 1), jnp.float32),
            jax.ShapeDtypeStruct((c, 1), moving_mean.dtype),
            jax.ShapeDtypeStruct((c, 1), moving_var.dtype),
        ),
        grid_spec=pltpu.PrefetchScalarGridSpec(
            num_scalar_prefetch=0,
            grid=(n, n_lt),
            in_specs=[x_spec, vec_spec, vec_spec, vec_spec, vec_spec],
            out_specs=(vec_spec, vec_spec, vec_spec, vec_spec),
            scratch_shapes=[pltpu.VMEM((c, 1), jnp.float32),
                            pltpu.VMEM((c, 1), jnp.float32)],
        ),
        compiler_params=pltpu.CompilerParams(
            dimension_semantics=("arbitrary", "arbitrary"),
            vmem_limit_bytes=_VMEM_LIMIT),
    )(x3, g, b, mm, mv)

    # Pass 2: y = x * scale + shift, fully parallel grid (megacore sharding on v7x).
    y3 = pl.pallas_call(
        _bn_apply_kernel,
        out_shape=jax.ShapeDtypeStruct((n, c, l), x_nchw.dtype),
        grid_spec=pltpu.PrefetchScalarGridSpec(
            num_scalar_prefetch=0,
            grid=(n, n_lt),
            in_specs=[vec_spec, vec_spec, x_spec],
            out_specs=x_spec,
        ),
        compiler_params=pltpu.CompilerParams(
            dimension_semantics=("parallel", "parallel"),
            vmem_limit_bytes=_VMEM_LIMIT),
    )(scale, shift, x3)

    y = y3.reshape(n, c, h, w)
    return y, new_mm.reshape(1, c, 1, 1), new_mv.reshape(1, c, 1, 1)


def batch_norm_ref(x, gamma, beta, moving_mean, moving_var):
    mean = jnp.mean(x, axis=(0, 2, 3), keepdims=True)
    var = jnp.mean((x - mean) ** 2, axis=(0, 2, 3), keepdims=True)
    x_hat = (x - mean) / jnp.sqrt(var + EPS)
    y = gamma * x_hat + beta
    new_mm = MOMENTUM * moving_mean + (1.0 - MOMENTUM) * mean
    new_mv = MOMENTUM * moving_var + (1.0 - MOMENTUM) * var
    return y, new_mm, new_mv


if __name__ == "__main__":
    key = jax.random.PRNGKey(0)
    N, C, H, W = 2, 4, 16, 16

    x = jax.random.normal(key, (N, C, H, W), dtype=jnp.float32)

    # Deterministic parameter init, matching BatchNorm.__init__ (num_dims=4).
    gamma = jnp.ones((1, C, 1, 1), dtype=jnp.float32)
    beta = jnp.zeros((1, C, 1, 1), dtype=jnp.float32)
    moving_mean = jnp.zeros((1, C, 1, 1), dtype=jnp.float32)
    moving_var = jnp.zeros((1, C, 1, 1), dtype=jnp.float32)

    y, new_mm, new_mv = batch_norm_2d(x, gamma, beta, moving_mean, moving_var)
    jax.block_until_ready((y, new_mm, new_mv))

    y_ref, mm_ref, mv_ref = batch_norm_ref(x, gamma, beta, moving_mean, moving_var)
    assert jnp.allclose(y, y_ref, atol=1e-4, rtol=1e-4)
    assert jnp.allclose(new_mm, mm_ref, atol=1e-4, rtol=1e-4)
    assert jnp.allclose(new_mv, mv_ref, atol=1e-4, rtol=1e-4)

    print("KERNEL_OK")
</pallas_src>

<mosaic_0001>
module attributes {stable_mosaic.version = 11 : i64} {
  func.func @_bn_reduce_kernel(%arg0: i32, %arg1: i32, %arg2: memref<1x4x256xf32, #tpu.memory_space<vmem>>, %arg3: memref<4x1xf32, #tpu.memory_space<vmem>>, %arg4: memref<4x1xf32, #tpu.memory_space<vmem>>, %arg5: memref<4x1xf32, #tpu.memory_space<vmem>>, %arg6: memref<4x1xf32, #tpu.memory_space<vmem>>, %arg7: memref<4x1xf32, #tpu.memory_space<vmem>>, %arg8: memref<4x1xf32, #tpu.memory_space<vmem>>, %arg9: memref<4x1xf32, #tpu.memory_space<vmem>>, %arg10: memref<4x1xf32, #tpu.memory_space<vmem>>, %arg11: memref<4x1xf32, #tpu.memory_space<vmem>>, %arg12: memref<4x1xf32, #tpu.memory_space<vmem>>) attributes {dimension_semantics = [#tpu.dimension_semantics<arbitrary>, #tpu.dimension_semantics<arbitrary>], iteration_bounds = array<i64: 2, 1>, scalar_prefetch = 0 : i64, scratch_operands = 2 : i64, tpu.core_type = #tpu.core_type<tc>, window_params = [{transform_indices = @transform_0, window_bounds = array<i64: 1, 4, 256>}, {pipeline_mode = #tpu.pipeline_mode<synchronous>, transform_indices = @transform_1, window_bounds = array<i64: 4, 1>}, {pipeline_mode = #tpu.pipeline_mode<synchronous>, transform_indices = @transform_2, window_bounds = array<i64: 4, 1>}, {pipeline_mode = #tpu.pipeline_mode<synchronous>, transform_indices = @transform_3, window_bounds = array<i64: 4, 1>}, {pipeline_mode = #tpu.pipeline_mode<synchronous>, transform_indices = @transform_4, window_bounds = array<i64: 4, 1>}, {pipeline_mode = #tpu.pipeline_mode<synchronous>, transform_indices = @transform_5, window_bounds = array<i64: 4, 1>}, {pipeline_mode = #tpu.pipeline_mode<synchronous>, transform_indices = @transform_6, window_bounds = array<i64: 4, 1>}, {pipeline_mode = #tpu.pipeline_mode<synchronous>, transform_indices = @transform_7, window_bounds = array<i64: 4, 1>}, {pipeline_mode = #tpu.pipeline_mode<synchronous>, transform_indices = @transform_8, window_bounds = array<i64: 4, 1>}]} {
    %c0_i32 = arith.constant 0 : i32
    %0 = arith.cmpi eq, %arg0, %c0_i32 : i32
    %c0_i32_0 = arith.constant 0 : i32
    %1 = arith.cmpi eq, %arg1, %c0_i32_0 : i32
    %2 = arith.andi %0, %1 : i1
    %3 = arith.extui %2 : i1 to i32
    %c0_i32_1 = arith.constant 0 : i32
    %4 = arith.cmpi ne, %3, %c0_i32_1 : i32
    scf.if %4 {
      %cst_15 = arith.constant 0.000000e+00 : f32
      %23 = vector.broadcast %cst_15 : f32 to vector<4x1xf32>
      %c0_16 = arith.constant 0 : index
      %c0_17 = arith.constant 0 : index
      %24 = vector.load %arg11[%c0_16, %c0_17] : memref<4x1xf32, #tpu.memory_space<vmem>>, vector<4x1xf32>
      tpu.vector_store %arg11[%c0_16, %c0_17], %23 {strides = array<i32>} : memref<4x1xf32, #tpu.memory_space<vmem>>, vector<4x1xf32>,
      %cst_18 = arith.constant 0.000000e+00 : f32
      %25 = vector.broadcast %cst_18 : f32 to vector<4x1xf32>
      %c0_19 = arith.constant 0 : index
      %c0_20 = arith.constant 0 : index
      %26 = vector.load %arg12[%c0_19, %c0_20] : memref<4x1xf32, #tpu.memory_space<vmem>>, vector<4x1xf32>
      tpu.vector_store %arg12[%c0_19, %c0_20], %25 {strides = array<i32>} : memref<4x1xf32, #tpu.memory_space<vmem>>, vector<4x1xf32>,
    } else {
    }
    %c0 = arith.constant 0 : index
    %c0_2 = arith.constant 0 : index
    %c0_3 = arith.constant 0 : index
    %5 = vector.load %arg2[%c0, %c0_2, %c0_3] : memref<1x4x256xf32, #tpu.memory_space<vmem>>, vector<1x4x256xf32>
    %6 = vector.shape_cast %5 : vector<1x4x256xf32> to vector<4x256xf32>
    %c0_4 = arith.constant 0 : index
    %c0_5 = arith.constant 0 : index
    %7 = vector.load %arg11[%c0_4, %c0_5] : memref<4x1xf32, #tpu.memory_space<vmem>>, vector<4x1xf32>
    %cst = arith.constant dense<0.000000e+00> : vector<4xf32>
    %8 = vector.multi_reduction <add>, %6, %cst [1] : vector<4x256xf32> to vector<4xf32>
    %9 = vector.shape_cast %8 : vector<4xf32> to vector<4x1xf32>
    %10 = arith.addf %7, %9 : vector<4x1xf32>
    %c0_6 = arith.constant 0 : index
    %c0_7 = arith.constant 0 : index
    %11 = vector.load %arg11[%c0_6, %c0_7] : memref<4x1xf32, #tpu.memory_space<vmem>>, vector<4x1xf32>
    tpu.vector_store %arg11[%c0_6, %c0_7], %10 {strides = array<i32>} : memref<4x1xf32, #tpu.memory_space<vmem>>, vector<4x1xf32>,
    %c0_8 = arith.constant 0 : index
    %c0_9 = arith.constant 0 : index
    %12 = vector.load %arg12[%c0_8, %c0_9] : memref<4x1xf32, #tpu.memory_space<vmem>>, vector<4x1xf32>
    %13 = arith.mulf %6, %6 : vector<4x256xf32>
    %cst_10 = arith.constant dense<0.000000e+00> : vector<4xf32>
    %14 = vector.multi_reduction <add>, %13, %cst_10 [1] : vector<4x256xf32> to vector<4xf32>
    %15 = vector.shape_cast %14 : vector<4xf32> to vector<4x1xf32>
    %16 = arith.addf %12, %15 : vector<4x1xf32>
    %c0_11 = arith.constant 0 : index
    %c0_12 = arith.constant 0 : index
    %17 = vector.load %arg12[%c0_11, %c0_12] : memref<4x1xf32, #tpu.memory_space<vmem>>, vector<4x1xf32>
    tpu.vector_store %arg12[%c0_11, %c0_12], %16 {strides = array<i32>} : memref<4x1xf32, #tpu.memory_space<vmem>>, vector<4x1xf32>,
    %c1_i32 = arith.constant 1 : i32
    %18 = arith.cmpi eq, %arg0, %c1_i32 : i32
    %c0_i32_13 = arith.constant 0 : i32
    %19 = arith.cmpi eq, %arg1, %c0_i32_13 : i32
    %20 = arith.andi %18, %19 : i1
    %21 = arith.extui %20 : i1 to i32
    %c0_i32_14 = arith.constant 0 : i32
    %22 = arith.cmpi ne, %21, %c0_i32_14 : i32
    scf.if %22 {
      %c0_15 = arith.constant 0 : index
      %c0_16 = arith.constant 0 : index
      %23 = vector.load %arg11[%c0_15, %c0_16] : memref<4x1xf32, #tpu.memory_space<vmem>>, vector<4x1xf32>
      %cst_17 = arith.constant 0.001953125 : f32
      %24 = vector.broadcast %cst_17 : f32 to vector<4x1xf32>
      %25 = arith.mulf %23, %24 : vector<4x1xf32>
      %c0_18 = arith.constant 0 : index
      %c0_19 = arith.constant 0 : index
      %26 = vector.load %arg12[%c0_18, %c0_19] : memref<4x1xf32, #tpu.memory_space<vmem>>, vector<4x1xf32>
      %cst_20 = arith.constant 0.001953125 : f32
      %27 = vector.broadcast %cst_20 : f32 to vector<4x1xf32>
      %28 = arith.mulf %26, %27 : vector<4x1xf32>
      %29 = arith.mulf %25, %25 : vector<4x1xf32>
      %30 = arith.subf %28, %29 : vector<4x1xf32>
      %cst_21 = arith.constant 9.99999974E-6 : f32
      %31 = vector.broadcast %cst_21 : f32 to vector<4x1xf32>
      %32 = arith.addf %30, %31 : vector<4x1xf32>
      %33 = math.rsqrt %32 : vector<4x1xf32>
      %c0_22 = arith.constant 0 : index
      %c0_23 = arith.constant 0 : index
      %34 = vector.load %arg3[%c0_22, %c0_23] : memref<4x1xf32, #tpu.memory_space<vmem>>, vector<4x1xf32>
      %c0_24 = arith.constant 0 : index
      %c0_25 = arith.constant 0 : index
      %35 = vector.load %arg4[%c0_24, %c0_25] : memref<4x1xf32, #tpu.memory_space<vmem>>, vector<4x1xf32>
      %36 = arith.mulf %34, %33 : vector<4x1xf32>
      %37 = arith.mulf %25, %36 : vector<4x1xf32>
      %38 = arith.subf %35, %37 : vector<4x1xf32>
      %c0_26 = arith.constant 0 : index
      %c0_27 = arith.constant 0 : index
      %39 = vector.load %arg7[%c0_26, %c0_27] : memref<4x1xf32, #tpu.memory_space<vmem>>, vector<4x1xf32>
      tpu.vector_store %arg7[%c0_26, %c0_27], %36 {strides = array<i32>} : memref<4x1xf32, #tpu.memory_space<vmem>>, vector<4x1xf32>,
      %c0_28 = arith.constant 0 : index
      %c0_29 = arith.constant 0 : index
      %40 = vector.load %arg8[%c0_28, %c0_29] : memref<4x1xf32, #tpu.memory_space<vmem>>, vector<4x1xf32>
      tpu.vector_store %arg8[%c0_28, %c0_29], %38 {strides = array<i32>} : memref<4x1xf32, #tpu.memory_space<vmem>>, vector<4x1xf32>,
      %c0_30 = arith.constant 0 : index
      %c0_31 = arith.constant 0 : index
      %41 = vector.load %arg5[%c0_30, %c0_31] : memref<4x1xf32, #tpu.memory_space<vmem>>, vector<4x1xf32>
      %cst_32 = arith.constant 0.899999976 : f32
      %42 = vector.broadcast %cst_32 : f32 to vector<4x1xf32>
      %43 = arith.mulf %42, %41 : vector<4x1xf32>
      %cst_33 = arith.constant 1.000000e-01 : f32
      %44 = vector.broadcast %cst_33 : f32 to vector<4x1xf32>
      %45 = arith.mulf %44, %25 : vector<4x1xf32>
      %46 = arith.addf %43, %45 : vector<4x1xf32>
      %c0_34 = arith.constant 0 : index
      %c0_35 = arith.constant 0 : index
      %47 = vector.load %arg9[%c0_34, %c0_35] : memref<4x1xf32, #tpu.memory_space<vmem>>, vector<4x1xf32>
      tpu.vector_store %arg9[%c0_34, %c0_35], %46 {strides = array<i32>} : memref<4x1xf32, #tpu.memory_space<vmem>>, vector<4x1xf32>,
      %c0_36 = arith.constant 0 : index
      %c0_37 = arith.constant 0 : index
      %48 = vector.load %arg6[%c0_36, %c0_37] : memref<4x1xf32, #tpu.memory_space<vmem>>, vector<4x1xf32>
      %cst_38 = arith.constant 0.899999976 : f32
      %49 = vector.broadcast %cst_38 : f32 to vector<4x1xf32>
      %50 = arith.mulf %49, %48 : vector<4x1xf32>
      %cst_39 = arith.constant 1.000000e-01 : f32
      %51 = vector.broadcast %cst_39 : f32 to vector<4x1xf32>
      %52 = arith.mulf %51, %30 : vector<4x1xf32>
      %53 = arith.addf %50, %52 : vector<4x1xf32>
      %c0_40 = arith.constant 0 : index
      %c0_41 = arith.constant 0 : index
      %54 = vector.load %arg10[%c0_40, %c0_41] : memref<4x1xf32, #tpu.memory_space<vmem>>, vector<4x1xf32>
      tpu.vector_store %arg10[%c0_40, %c0_41], %53 {strides = array<i32>} : memref<4x1xf32, #tpu.memory_space<vmem>>, vector<4x1xf32>,
    } else {
    }
    return
  }
  func.func @transform_0(%arg0: i32, %arg1: i32) -> (i32, i32, i32) {
    %c0_i32 = arith.constant 0 : i32
    %c0_i32_0 = arith.constant 0 : i32
    return %arg0, %c0_i32, %arg1 : i32, i32, i32
  }
  func.func @transform_1(%arg0: i32, %arg1: i32) -> (i32, i32) {
    %c0_i32 = arith.constant 0 : i32
    %c0_i32_0 = arith.constant 0 : i32
    %c0_i32_1 = arith.constant 0 : i32
    return %c0_i32, %c0_i32_0 : i32, i32
  }
  func.func @transform_2(%arg0: i32, %arg1: i32) -> (i32, i32) {
    %c0_i32 = arith.constant 0 : i32
    %c0_i32_0 = arith.constant 0 : i32
    %c0_i32_1 = arith.constant 0 : i32
    return %c0_i32, %c0_i32_0 : i32, i32
  }
  func.func @transform_3(%arg0: i32, %arg1: i32) -> (i32, i32) {
    %c0_i32 = arith.constant 0 : i32
    %c0_i32_0 = arith.constant 0 : i32
    %c0_i32_1 = arith.constant 0 : i32
    return %c0_i32, %c0_i32_0 : i32, i32
  }
  func.func @transform_4(%arg0: i32, %arg1: i32) -> (i32, i32) {
    %c0_i32 = arith.constant 0 : i32
    %c0_i32_0 = arith.constant 0 : i32
    %c0_i32_1 = arith.constant 0 : i32
    return %c0_i32, %c0_i32_0 : i32, i32
  }
  func.func @transform_5(%arg0: i32, %arg1: i32) -> (i32, i32) {
    %c0_i32 = arith.constant 0 : i32
    %c0_i32_0 = arith.constant 0 : i32
    %c0_i32_1 = arith.constant 0 : i32
    return %c0_i32, %c0_i32_0 : i32, i32
  }
  func.func @transform_6(%arg0: i32, %arg1: i32) -> (i32, i32) {
    %c0_i32 = arith.constant 0 : i32
    %c0_i32_0 = arith.constant 0 : i32
    %c0_i32_1 = arith.constant 0 : i32
    return %c0_i32, %c0_i32_0 : i32, i32
  }
  func.func @transform_7(%arg0: i32, %arg1: i32) -> (i32, i32) {
    %c0_i32 = arith.constant 0 : i32
    %c0_i32_0 = arith.constant 0 : i32
    %c0_i32_1 = arith.constant 0 : i32
    return %c0_i32, %c0_i32_0 : i32, i32
  }
  func.func @transform_8(%arg0: i32, %arg1: i32) -> (i32, i32) {
    %c0_i32 = arith.constant 0 : i32
    %c0_i32_0 = arith.constant 0 : i32
    %c0_i32_1 = arith.constant 0 : i32
    return %c0_i32, %c0_i32_0 : i32, i32
  }
}

</mosaic_0001>

<bundles_post_ra>
// kernel: tpu_custom_call.1
= control target key start
LH: loop header
LB: loop body
LE: loop exit
PB: predicated region body
PF: predicated region fallthrough
CT: control target
= control target key end

     0   :  { %s547_s27 = smov 0   ;;  %s549_s28 = smov 0   ;;  %s613_s0 = inlined_call_operand.vmem [shape: f32[2,4,256], index: 0, kind: input, shape index: {}]   ;;  %s614_s1 = inlined_call_operand.vmem [shape: f32[4,1], index: 1, kind: input, shape index: {}]   ;;  %s615_s2 = inlined_call_operand.vmem [shape: f32[4,1], index: 2, kind: input, shape index: {}]   ;;  %s616_s3 = inlined_call_operand.vmem [shape: f32[4,1], index: 3, kind: input, shape index: {}]   ;;  %s617_s4 = inlined_call_operand.vmem [shape: f32[4,1], index: 4, kind: input, shape index: {}]   ;;  %s618_s5 = inlined_call_operand.vmem [shape: f32[4,1], index: 5, kind: output, shape index: {0}]   ;;  %s619_s6 = inlined_call_operand.vmem [shape: f32[4,1], index: 6, kind: output, shape index: {1}]   ;;  %s620_s7 = inlined_call_operand.vmem [shape: f32[4,1], index: 7, kind: output, shape index: {2}]   ;;  %s621_s8 = inlined_call_operand.vmem [shape: f32[4,1], index: 8, kind: output, shape index: {3}]  }
   0x1   :  { %s551_s29 = smov 0  }
   0x2 LB: > { %s31_s30 = sadd.s32 1, %s495_s28  ;;  %p439_p0 = scmp.ge.s32.totalorder %s499_s29, 1  ;;  %s499_s29 = sphi %s551_s29, %s19_s29   ;;  %s495_s28 = sphi %s549_s28, %s623_s28   ;;  %s491_s27 = sphi %s547_s27, %s622_s27  }
   0x3   : > { %p33_p1 = scmp.ge.s32.totalorder %s31_s30, 2  ;;  %p268_p2 = scmp.lt.s32.totalorder %s499_s29, 3 }
   0x5   : > { %s625_s30 = smov (%p33_p1, %s31_s30), 0  ;;  %p269_p3 = pnand %p439_p0, %p268_p2 }
   0x6   : > { %p302_p4 = scmp.lt.s32.totalorder (!%p269_p3), %s491_s27, 1  ;;  %p311_p5 = scmp.eq.s32.totalorder (!%p269_p3), %s491_s27, 0 }
   0x7   : > { %272 = sbr.rel (%p269_p3) target bundleno = 208 (0xd0), region = 40 }
   0xe   : > { %s303_s9 = scalar_select %p302_p4, %s491_s27, 1 }
   0xf   : > { %316 = sbr.rel (!%p311_p5) target bundleno = 22 (0x16), region = 44  ;;  %vm317_vm0 = vcmask (%p311_p5), 3072   ;;  %v501_v0 = vmov (%p311_p5), 0.0  }
  0x10   : > { %s446_s10 = sshll.u32 %s303_s9, 3  ;;  %318 = vst.msk [vmem:[#allocation2] sm:$0xf] (%p311_p5), %vm317_vm0, %v501_v0  ;;  %319 = vst.msk [vmem:[#allocation3] sm:$0xf] (%p311_p5), %vm317_vm0, %v501_v0 }
  0x11   : > { %s309_s13 = scalar_lea.vmem %s613_s0, %s446_s10 }
  0x16 PF: > { %v320_v1 = vld [vmem:[%s309_s13] sm:$0xff]  ;;  %vm325_vm1 = vcmask 1043456   ;;  %p346_p6 = scmp.eq.s32.totalorder %s491_s27, 1  ;;  %vm332_vm2 = vcmask 3072  }
  0x17   : > { %v323_v2 = vcombine.high %v320_v1, %v320_v1  ;;  %v326_v3 = vsel %vm325_vm1, %v320_v1, 0.0  ;;  %v335_v4 = vmul.f32 %v320_v1, %v320_v1  ;;  %v321_v11 = vld [vmem:[#allocation2] sm:$0xf]  ;;  %v334_v14 = vld [vmem:[#allocation3] sm:$0xf] }
  0x18   : > { %v366_v21 = vld [vmem:[%s616_s3] sm:$0xf] (%p346_p6) }
  0x19   : > { %v327_v5 = vsel %vm325_vm1, %v323_v2, 0.0  ;;  %v337_v6 = vcombine.high %v335_v4, %v335_v4  ;;  %v339_v7 = vsel %vm325_vm1, %v335_v4, 0.0  ;;  %v367_v22 = vmul.f32 (%p346_p6), 0.9, %v366_v21  ;;  %v371_v23 = vld [vmem:[%s617_s4] sm:$0xf] (%p346_p6) }
  0x1a   : > { %v328_v8 = vadd.f32 %v327_v5, %v326_v3  ;;  %v372_v28 = vmul.f32 (%p346_p6), 0.9, %v371_v23  ;;  %v359_v32 = vld [vmem:[%s614_s1] sm:$0xf] (%p346_p6) }
  0x1b   : > { %v340_v9 = vsel %vm325_vm1, %v337_v6, 0.0  ;;  %v360_v35 = vld [vmem:[%s615_s2] sm:$0xf] (%p346_p6) }
  0x1c   : > { %329 = vadd.xlane.f32.xlu0 %v328_v8  ;;  %v341_v10 = vadd.f32 %v340_v9, %v339_v7 }
  0x20   : > { %342 = vadd.xlane.f32.xlu0 %v341_v10 }
  0xa9   : > { %v330_v12 = vpop.xlane.xlu0 %329 }
  0xaa   : > { %v331_v13 = vadd.f32 %v330_v12, %v321_v11  ;;  %350 = sbr.rel (!%p346_p6) target bundleno = 208 (0xd0), region = 48 }
  0xac   : > { %333 = vst.msk [vmem:[#allocation2] sm:$0xf] %vm332_vm2, %v331_v13 }
  0xad   : > { %v343_v15 = vpop.xlane.xlu0 %342 }
  0xae   : > { %v344_v16 = vadd.f32 %v343_v15, %v334_v14 }
  0xb0   : > { %345 = vst.msk [vmem:[#allocation3] sm:$0xf] %vm332_vm2, %v344_v16 }
  0xb3   : > { %v351_v17 = vld [vmem:[#allocation2] sm:$0xf] }
  0xb4   : > { %v352_v19 = vmul.f32 0.001953125, %v351_v17 }
  0xb6   : > { %v355_v24 = vmul.f32 %v352_v19, %v352_v19  ;;  %v368_v25 = vmul.f32 0.1, %v352_v19 }
  0xb7   : > { %v353_v18 = vld [vmem:[#allocation3] sm:$0xf] }
  0xb8   : > { %v354_v20 = vmul.f32 0.001953125, %v353_v18  ;;  %v369_v27 = vadd.f32 %v368_v25, %v367_v22 }
  0xba   : > { %v356_v26 = vsub.f32 %v354_v20, %v355_v24  ;;  %370 = vst.msk [vmem:[%s620_s7] sm:$0xf] %vm332_vm2, %v369_v27 }
  0xbc   : > { %v357_v29 = vadd.f32 1e-05, %v356_v26  ;;  %v373_v30 = vmul.f32 0.1, %v356_v26 }
  0xbe   : > { %475 = vrsqrt.f32 %v357_v29  ;;  %v374_v31 = vadd.f32 %v373_v30, %v372_v28 }
  0xc0   : > { %375 = vst.msk [vmem:[%s621_s8] sm:$0xf] %vm332_vm2, %v374_v31 }
  0xc8   : > { %v476_v33 = vpop.eup %475 }
  0xc9   : > { %v361_v34 = vmul.f32 %v476_v33, %v359_v32 }
  0xcb   : > { %364 = vst.msk [vmem:[%s618_s5] sm:$0xf] %vm332_vm2, %v361_v34  ;;  %v362_v36 = vmul.f32 %v361_v34, %v352_v19 }
  0xcd   : > { %v363_v37 = vsub.f32 %v360_v35, %v362_v36 }
  0xcf   : > { %365 = vst.msk [vmem:[%s619_s6] sm:$0xf] %vm332_vm2, %v363_v37 }
  0xd0 PF: > { %s19_s29 = sadd.s32 1, %s499_s29   ;;  %s622_s27 = smov %s495_s28 }
  0xd1   : > { %p16_p7 = scmp.ge.s32.totalorder %s19_s29, 4   ;;  %s623_s28 = smov %s625_s30 }
  0xd3   :  { %18 = sbr.rel (!%p16_p7) target bundleno = 2 (0x2), region = 98 }

</bundles_post_ra>
